<compile_context>
chip_gen: v7x
topology: tpu7x:2x2x1
jax: 0.10.0
libtpu: 0.0.40
codegen_flags: <defaults>
</compile_context>

<pallas_src>
import jax
import jax.numpy as jnp
from jax.experimental import pallas as pl
from jax.experimental.pallas import tpu as pltpu


def _round_up(x, m):
    return ((x + m - 1) // m) * m


def _vmem_capacity_bytes():
    """Per-core VMEM capacity; conservative fallback if the query fails."""
    try:
        return int(pltpu.get_tpu_info().vmem_capacity_bytes)
    except Exception:
        return 64 * 1024 * 1024  # v7x per-TensorCore VMEM (most restrictive)


def _invariant_spec(shape):
    """Grid-invariant operand: same block every step -> single-buffer it."""
    try:
        return pl.BlockSpec(shape, lambda i: (0, 0), pipeline_mode=pl.Buffered(1))
    except TypeError:  # very old jax without pipeline_mode: fall back to default
        return pl.BlockSpec(shape, lambda i: (0, 0))


def _gated_attn_kernel(x_ref, wT_ref, bT_ref, ww_ref, bw_ref, out_ref):
    """One row-tile of the gated attention score computation.

    x_ref  : (TM, n_in)     VMEM  input rows (streamed, double-buffered)
    wT_ref : (2*Lp, n_in)   VMEM  [W_tanh ; W_sigmoid] fused, transposed
    bT_ref : (2*Lp, 1)      VMEM  [b_tanh ; b_sigmoid] fused, column vector
    ww_ref : (1, Lp)        VMEM  final scoring weight (row vector, zero-padded)
    bw_ref : (1, 1)         VMEM  final scoring bias
    out_ref: (1, TM)        VMEM  lane-dense scores for this tile (float32)
    """
    lp = ww_ref.shape[1]

    # (2Lp, n_in) contracted with (TM, n_in) over the shared minor dim ->
    # (2Lp, TM).  This is the native q @ k^T MXU orientation: no operand
    # transpose is materialized, and the result is lane-dense along TM.
    h = jax.lax.dot_general(
        wT_ref[...], x_ref[...],
        dimension_numbers=(((1,), (1,)), ((), ())),
        preferred_element_type=jnp.float32)
    h = h + bT_ref[...]                                   # lane-broadcast bias

    # Branch split on a sublane boundary (Lp is a multiple of 8) -> free slice.
    t = jnp.tanh(h[:lp, :])
    # sigmoid(z) = 0.5 * (tanh(z/2) + 1): single EUP op per element.
    s = 0.5 * (jnp.tanh(0.5 * h[lp:, :]) + 1.0)
    gated = t * s                                         # (Lp, TM) lane-dense

    # Standard-orientation (1, Lp) @ (Lp, TM) -> lane-dense (1, TM) score row,
    # so the writeback is an unmasked full-width vector store.
    score = jnp.dot(ww_ref[...], gated, preferred_element_type=jnp.float32)

    out_ref[...] = (score + bw_ref[...]).astype(out_ref.dtype)


def _choose_tile_m(M, n_in, itemsize, weight_bytes, requested, vmem_limit):
    """Largest row tile that (a) is a multiple of 128, (b) keeps the full
    working set (2 x-tile buffers + single-buffered weights + output blocks +
    compiler scratch) within the VMEM limit, (c) never exceeds M, and
    (d) leaves >= 2 grid steps for megacore sharding when M >= 256."""
    row_bytes = _round_up(n_in, 128) * itemsize
    headroom = 4 * 1024 * 1024            # output blocks, sems, internal scratch
    x_budget = max(vmem_limit - weight_bytes - headroom, 2 * 128 * row_bytes)
    max_tm = max(128, (x_budget // (2 * row_bytes)) // 128 * 128)
    tm = min(requested, max_tm)
    if M <= tm:
        if M >= 256:
            # >= 2 grid steps so the "parallel" axis spans both v7x TensorCores
            # (no-op on single-TC v5e/v6e).
            tm = min(tm, _round_up((M + 1) // 2, 128))
        else:
            tm = M                        # single block covering the whole array
    return tm


def prepare_params(params):
    """One-time fusion / transposition of the branch parameters.

    Hoisted out of the per-call wrapper so the fused operands are not
    re-materialized in HBM on every forward call.  n_latent is zero-padded up
    to a multiple of 8 so the tanh/sigmoid split in the kernel lands on a
    sublane boundary (padding contributes exactly zero to the score).
    """
    wt, bt = params["wt"], params["bt"]
    ws, bs = params["ws"], params["bs"]
    ww, bw = params["ww"], params["bw"]
    n_in, n_latent = wt.shape
    lp = _round_up(max(n_latent, 1), 8)

    def pad_wT(w):   # (n_in, L) -> (Lp, n_in)
        return jnp.pad(w.T, ((0, lp - n_latent), (0, 0)))

    def pad_b(b):    # (1, L) -> (Lp, 1)
        return jnp.pad(b.reshape(n_latent, 1), ((0, lp - n_latent), (0, 0)))

    return {
        "wT": jnp.concatenate([pad_wT(wt), pad_wT(ws)], axis=0),   # (2Lp, n_in)
        "bT": jnp.concatenate([pad_b(bt), pad_b(bs)], axis=0),     # (2Lp, 1)
        "ww": jnp.pad(ww.reshape(1, n_latent), ((0, 0), (0, lp - n_latent))),
        "bw": bw.reshape(1, 1),
        "n_in": n_in,
        "n_latent": n_latent,
        "lp": lp,
    }


def gated_attn_pallas(x, params, *, tile_m=None, stream_dtype=None):
    """Gated attention forward.

    x: (B, N, n_in) or (N, n_in)
    params: raw {"wt","bt","ws","bs","ww","bw"} or prepare_params() output.
    stream_dtype: optional (e.g. jnp.bfloat16) streaming dtype for x / W_fused;
        accumulation and gating stay in float32.  Default None = exact f32.

    Returns (attn_scores, x) with attn_scores shaped (..., 1) in float32,
    matching the PyTorch module's eval-mode forward.
    """
    if "wT" not in params:
        params = prepare_params(params)
    wT, bT, ww, bw = params["wT"], params["bT"], params["ww"], params["bw"]
    n_in, lp = params["n_in"], params["lp"]

    orig_shape = x.shape
    assert orig_shape[-1] == n_in, "feature dim mismatch"
    x_flat = x.reshape(-1, n_in)
    M = x_flat.shape[0]

    if stream_dtype is not None:
        x_flat = x_flat.astype(stream_dtype)
        wT = wT.astype(stream_dtype)

    # Capacity-derived VMEM budget: ~80 MiB on 128 MiB parts, ~40 MiB on v7x.
    capacity = _vmem_capacity_bytes()
    vmem_limit = (capacity * 5) // 8
    if tile_m is None:
        tile_m = 512 if capacity <= 64 * 1024 * 1024 else 1024
    tile_m = max(128, (tile_m // 128) * 128)

    x_itemsize = jnp.dtype(x_flat.dtype).itemsize
    w_itemsize = jnp.dtype(wT.dtype).itemsize
    # Single-buffered (Buffered(1)) weight blocks, with lane/sublane padding.
    weight_bytes = (2 * lp * _round_up(n_in, 128) * w_itemsize   # wT
                    + 2 * lp * 128 * 4                           # bT
                    + 8 * _round_up(lp, 128) * 4                 # ww
                    + 8 * 128 * 4)                               # bw

    tm = _choose_tile_m(M, n_in, x_itemsize, weight_bytes, tile_m, vmem_limit)
    grid = (pl.cdiv(M, tm),)

    kernel = pl.pallas_call(
        _gated_attn_kernel,
        out_shape=jax.ShapeDtypeStruct((1, M), jnp.float32),
        grid_spec=pltpu.PrefetchScalarGridSpec(
            num_scalar_prefetch=0,
            grid=grid,
            in_specs=[
                # x tile marches down the rows (partial final block allowed).
                pl.BlockSpec((tm, n_in), lambda i: (i, 0)),
                # Grid-invariant fused weights / biases: single-buffered.
                _invariant_spec((2 * lp, n_in)),
                _invariant_spec((2 * lp, 1)),
                _invariant_spec((1, lp)),
                _invariant_spec((1, 1)),
            ],
            # Lane-dense output: last dim is the row tile.
            out_specs=pl.BlockSpec((1, tm), lambda i: (0, i)),
        ),
        compiler_params=pltpu.CompilerParams(
            dimension_semantics=("parallel",),
            vmem_limit_bytes=int(vmem_limit)),
    )

    scores_row = kernel(x_flat, wT, bT, ww, bw)          # (1, M) float32
    attn = scores_row.reshape(orig_shape[:-1] + (1,))
    return attn, x


def init_params(key, n_in, n_latent=None):
    """Deterministic parameter init mimicking nn.Linear defaults."""
    if n_latent is None:
        n_latent = (n_in + 1) // 2
    k = jax.random.split(key, 6)

    def lin(kw, kb, fan_in, fan_out):
        bound = 1.0 / jnp.sqrt(fan_in)
        w = jax.random.uniform(kw, (fan_in, fan_out), jnp.float32, -bound, bound)
        b = jax.random.uniform(kb, (1, fan_out), jnp.float32, -bound, bound)
        return w, b

    wt, bt = lin(k[0], k[1], n_in, n_latent)
    ws, bs = lin(k[2], k[3], n_in, n_latent)
    ww, bw = lin(k[4], k[5], n_latent, 1)
    return {"wt": wt, "bt": bt, "ws": ws, "bs": bs, "ww": ww, "bw": bw}


def gated_attn_ref(x, params):
    """Pure-JAX reference for correctness check."""
    t = jnp.tanh(x @ params["wt"] + params["bt"][0])
    s = jax.nn.sigmoid(x @ params["ws"] + params["bs"][0])
    return (t * s) @ params["ww"] + params["bw"][0]


if __name__ == "__main__":
    key = jax.random.PRNGKey(0)
    kx, kp, kx2, kp2 = jax.random.split(key, 4)

    # Small shapes consistent with the module: batch=2, instances=8, n_in=32.
    B, N, n_in = 2, 8, 32
    n_latent = (n_in + 1) // 2      # 16, matching module default

    x = jax.random.normal(kx, (B, N, n_in), dtype=jnp.float32)
    params = init_params(kp, n_in, n_latent)
    prepped = prepare_params(params)          # one-time param preparation

    attn, x_out = gated_attn_pallas(x, prepped)
    attn = jax.block_until_ready(attn)

    ref = gated_attn_ref(x, params)
    assert attn.shape == (B, N, 1)
    assert x_out.shape == x.shape
    assert jnp.allclose(attn, ref, atol=1e-4, rtol=1e-4)

    # Second check: 2-D input, multi-step grid with a partial final tile, and a
    # non-multiple-of-8 latent dim (exercises the sublane padding path).
    N2, n_in2 = 300, 30                       # n_latent defaults to 15 -> Lp=16
    x2 = jax.random.normal(kx2, (N2, n_in2), dtype=jnp.float32)
    params2 = init_params(kp2, n_in2)
    attn2, _ = gated_attn_pallas(x2, params2)
    attn2 = jax.block_until_ready(attn2)
    ref2 = gated_attn_ref(x2, params2)
    assert attn2.shape == (N2, 1)
    assert jnp.allclose(attn2, ref2, atol=1e-4, rtol=1e-4)

    print("KERNEL_OK")
</pallas_src>

<mosaic_0001>
module attributes {stable_mosaic.version = 11 : i64} {
  func.func @_gated_attn_kernel(%arg0: i32, %arg1: memref<16x32xf32, #tpu.memory_space<vmem>>, %arg2: memref<32x32xf32, #tpu.memory_space<vmem>>, %arg3: memref<32x1xf32, #tpu.memory_space<vmem>>, %arg4: memref<1x16xf32, #tpu.memory_space<vmem>>, %arg5: memref<1x1xf32, #tpu.memory_space<vmem>>, %arg6: memref<1x16xf32, #tpu.memory_space<vmem>>) attributes {dimension_semantics = [#tpu.dimension_semantics<parallel>], iteration_bounds = array<i64: 1>, scalar_prefetch = 0 : i64, scratch_operands = 0 : i64, tpu.core_type = #tpu.core_type<tc>, window_params = [{transform_indices = @transform_0, window_bounds = array<i64: 16, 32>}, {pipeline_mode = #tpu.pipeline_mode<synchronous>, transform_indices = @transform_1, window_bounds = array<i64: 32, 32>}, {pipeline_mode = #tpu.pipeline_mode<synchronous>, transform_indices = @transform_2, window_bounds = array<i64: 32, 1>}, {pipeline_mode = #tpu.pipeline_mode<synchronous>, transform_indices = @transform_3, window_bounds = array<i64: 1, 16>}, {pipeline_mode = #tpu.pipeline_mode<synchronous>, transform_indices = @transform_4, window_bounds = array<i64: 1, 1>}, {transform_indices = @transform_5, window_bounds = array<i64: 1, 16>}]} {
    %c0 = arith.constant 0 : index
    %c0_0 = arith.constant 0 : index
    %0 = vector.load %arg2[%c0, %c0_0] : memref<32x32xf32, #tpu.memory_space<vmem>>, vector<32x32xf32>
    %c0_1 = arith.constant 0 : index
    %c0_2 = arith.constant 0 : index
    %1 = vector.load %arg1[%c0_1, %c0_2] : memref<16x32xf32, #tpu.memory_space<vmem>>, vector<16x32xf32>
    %cst = arith.constant dense<0.000000e+00> : vector<32x16xf32>
    %2 = tpu.matmul %0, %1, %cst {dimension_numbers = #tpu.dot_dimension_numbers<[1], [1], [0], [0], [0, 0, 1, 0], [], []>} : vector<32x32xf32>, vector<16x32xf32>, vector<32x16xf32> -> vector<32x16xf32>
    %c0_3 = arith.constant 0 : index
    %c0_4 = arith.constant 0 : index
    %3 = vector.load %arg3[%c0_3, %c0_4] : memref<32x1xf32, #tpu.memory_space<vmem>>, vector<32x1xf32>
    %4 = vector.broadcast %3 : vector<32x1xf32> to vector<32x16xf32>
    %5 = arith.addf %2, %4 : vector<32x16xf32>
    %6 = vector.extract_strided_slice %5 {offsets = [0, 0], sizes = [16, 16], strides = [1, 1]} : vector<32x16xf32> to vector<16x16xf32>
    %7 = math.tanh %6 : vector<16x16xf32>
    %8 = vector.extract_strided_slice %5 {offsets = [16, 0], sizes = [16, 16], strides = [1, 1]} : vector<32x16xf32> to vector<16x16xf32>
    %cst_5 = arith.constant 5.000000e-01 : f32
    %9 = vector.broadcast %cst_5 : f32 to vector<16x16xf32>
    %10 = arith.mulf %9, %8 : vector<16x16xf32>
    %11 = math.tanh %10 : vector<16x16xf32>
    %cst_6 = arith.constant 1.000000e+00 : f32
    %12 = vector.broadcast %cst_6 : f32 to vector<16x16xf32>
    %13 = arith.addf %11, %12 : vector<16x16xf32>
    %cst_7 = arith.constant 5.000000e-01 : f32
    %14 = vector.broadcast %cst_7 : f32 to vector<16x16xf32>
    %15 = arith.mulf %14, %13 : vector<16x16xf32>
    %16 = arith.mulf %7, %15 : vector<16x16xf32>
    %c0_8 = arith.constant 0 : index
    %c0_9 = arith.constant 0 : index
    %17 = vector.load %arg4[%c0_8, %c0_9] : memref<1x16xf32, #tpu.memory_space<vmem>>, vector<1x16xf32>
    %cst_10 = arith.constant dense<0.000000e+00> : vector<1x16xf32>
    %18 = tpu.matmul %17, %16, %cst_10 {dimension_numbers = #tpu.dot_dimension_numbers<[1], [0], [0], [1], [0, 0, 1, 1], [], []>} : vector<1x16xf32>, vector<16x16xf32>, vector<1x16xf32> -> vector<1x16xf32>
    %c0_11 = arith.constant 0 : index
    %c0_12 = arith.constant 0 : index
    %19 = vector.load %arg5[%c0_11, %c0_12] : memref<1x1xf32, #tpu.memory_space<vmem>>, vector<1x1xf32>
    %20 = vector.broadcast %19 : vector<1x1xf32> to vector<1x16xf32>
    %21 = arith.addf %18, %20 : vector<1x16xf32>
    %c0_13 = arith.constant 0 : index
    %c0_14 = arith.constant 0 : index
    %22 = vector.load %arg6[%c0_13, %c0_14] : memref<1x16xf32, #tpu.memory_space<vmem>>, vector<1x16xf32>
    tpu.vector_store %arg6[%c0_13, %c0_14], %21 {strides = array<i32>} : memref<1x16xf32, #tpu.memory_space<vmem>>, vector<1x16xf32>,
    return
  }
  func.func @transform_0(%arg0: i32) -> (i32, i32) {
    %c0_i32 = arith.constant 0 : i32
    %c0_i32_0 = arith.constant 0 : i32
    return %arg0, %c0_i32 : i32, i32
  }
  func.func @transform_1(%arg0: i32) -> (i32, i32) {
    %c0_i32 = arith.constant 0 : i32
    %c0_i32_0 = arith.constant 0 : i32
    %c0_i32_1 = arith.constant 0 : i32
    return %c0_i32, %c0_i32_0 : i32, i32
  }
  func.func @transform_2(%arg0: i32) -> (i32, i32) {
    %c0_i32 = arith.constant 0 : i32
    %c0_i32_0 = arith.constant 0 : i32
    %c0_i32_1 = arith.constant 0 : i32
    return %c0_i32, %c0_i32_0 : i32, i32
  }
  func.func @transform_3(%arg0: i32) -> (i32, i32) {
    %c0_i32 = arith.constant 0 : i32
    %c0_i32_0 = arith.constant 0 : i32
    %c0_i32_1 = arith.constant 0 : i32
    return %c0_i32, %c0_i32_0 : i32, i32
  }
  func.func @transform_4(%arg0: i32) -> (i32, i32) {
    %c0_i32 = arith.constant 0 : i32
    %c0_i32_0 = arith.constant 0 : i32
    %c0_i32_1 = arith.constant 0 : i32
    return %c0_i32, %c0_i32_0 : i32, i32
  }
  func.func @transform_5(%arg0: i32) -> (i32, i32) {
    %c0_i32 = arith.constant 0 : i32
    %c0_i32_0 = arith.constant 0 : i32
    return %c0_i32, %arg0 : i32, i32
  }
}

</mosaic_0001>

<bundles_post_ra>
// kernel: tpu_custom_call.1
= control target key start
LH: loop header
LB: loop body
LE: loop exit
PB: predicated region body
PF: predicated region fallthrough
CT: control target
= control target key end

     0   :  { %s491_s0 = inlined_call_operand.hbm [shape: f32[16,32], index: 0, kind: input, shape index: {}]   ;;  %s492_s1 = inlined_call_operand.vmem [shape: f32[32,32], index: 1, kind: input, shape index: {}]   ;;  %s493_s2 = inlined_call_operand.vmem [shape: f32[32,1], index: 2, kind: input, shape index: {}]   ;;  %s494_s3 = inlined_call_operand.vmem [shape: f32[1,16], index: 3, kind: input, shape index: {}]   ;;  %s495_s4 = inlined_call_operand.<no memory space> [shape: f32[1,1], index: 4, kind: input, shape index: {}]   ;;  %s496_s5 = inlined_call_operand.hbm [shape: f32[1,16], index: 5, kind: output, shape index: {}]  }
   0x1   :  { %v10_v0 = vstv %s495_s4 }
   0x2   :  { %11 = vst [vmem:[#allocation2] sm:$0x1] %v10_v0 }
   0x3   :  { %12 = vsyncpa [#allocation4], 0 }
   0x4   :  { %13 = vsyncpa [#allocation5], 0  ;;  %s393_s20 = smov [#allocation3]   ;;  %s345_s24 = scalar_lea.hbm %s491_s0, 256 }
   0x5   :  { %s19_s21 = sshll.u32 %s393_s20, 4  ;;  %p346_p0 = scmp.ne.s32.totalorder %s491_s0, %s345_s24  ;;  %s20_s21 = int_to_ptr.vmem [resolvable:$true] %s19_s21 }
   0x6   :  { %p349_p1 = scmp.lt.u32.totalorder %s345_s24, %s491_s0 }
   0x8   :  { %p351_p2 = pnand %p349_p1, %p346_p0 }
   0xa   :  { %354 = shalt.err (!%p351_p2)
}
   0xb   :  { %s355_s4 = scalar_lea.vmem %s20_s21, 256  ;;  %p360_p4 = scmp.lt.s32.totalorder %s20_s21, %s20_s21 }
   0xc   :  { %p356_p3 = scmp.ne.s32.totalorder %s20_s21, %s355_s4  ;;  %p361_p5 = scmp.lt.s32.totalorder %s355_s4, %s355_s4 }
   0xe   :  { %p362_p6 = por %p361_p5, %p360_p4 }
  0x10   :  { %p363_p7 = pnand %p362_p6, %p356_p3 }
  0x12   :  { %366 = shalt.err (!%p363_p7)
}
  0x13   :  { %s394_s29 = smov 128   ;;  %s395_s30 = smov 8  }
  0x14   :  { %25 = dma.hbm_to_vmem [thread:$0]  %s491_s0, 256, %s20_s21, [#allocation4], %s394_s29, %s394_s29, %s395_s30  }
  0x15   :  { %389 = dma.done.wait [#allocation4], 256  }
  0x16   :  { %390 = vsyncadd [#allocation4], 4294967040  ;;  %v396_v1 = vmov 0   ;;  %vm67_vm0 = vcmask 261120   ;;  %v41_v2 = vld [vmem:[#allocation3] sm:$0xff]  ;;  %v42_v3 = vld [vmem:[#allocation3 + $0x8] sm:$0xff]  ;;  %v190_v42 = vlaneseq }
  0x17   :  { %335 = vset.pattern.permute.xlu0 %v396_v1  ;;  %336 = vset.pattern.permute.xlu1 %v396_v1  ;;  %vm319_vm1 = vmpackc.low %vm67_vm0, %vm67_vm0  ;;  %v37_v4 = vld [vmem:[%s492_s1] sm:$0xff]  ;;  %v318_v5 = vpack.c.bf16 %v42_v3, %v41_v2  ;;  %v45_v6 = vld [vmem:[%s493_s2 + $0x10] sm:$0xff]  ;;  %v397_v14 = vmov 0.0|0.0   ;;  %vm398_vm2 = vmmov 0   ;;  %v399_v15 = vmov 0.0   ;;  %s400_s23 = smov [#allocation6]  }
  0x18   :  { %305 = vmatprep.mubr.msk.f32.mxu0 %vm67_vm0, %v37_v4  ;;  %v43_v7 = vld [vmem:[%s493_s2] sm:$0xff]  ;;  %59 = vperm.xlu0 %335, %v45_v6   ;;  %v46_v8 = vld [vmem:[%s493_s2 + $0x18] sm:$0xff]  ;;  %v44_v9 = vld [vmem:[%s493_s2 + $0x8] sm:$0xff]  ;;  %vm194_vm3 = vcmask 130048   ;;  %v191_v43 = vshrl.u32 %v190_v42, 7  ;;  %s276_s24 = sshll.u32 %s400_s23, 4  ;;  %s277_s24 = int_to_ptr.vmem [resolvable:$true] %s276_s24 }
  0x19   :  { %320 = vmatprep.subr.msk.bf16.mxu0 %vm319_vm1, %v318_v5  ;;  %49 = vperm.xlu1 %336, %v43_v7   ;;  %v38_v10 = vld [vmem:[%s492_s1 + $0x8] sm:$0xff]  ;;  %v184_v11 = vld [vmem:[#allocation2] sm:$0x1]  ;;  %v39_v12 = vld [vmem:[%s492_s1 + $0x10] sm:$0xff]  ;;  %vm268_vm4 = vcmask 122880   ;;  %s367_s25 = scalar_lea.vmem %s277_s24, 16  ;;  %p372_p9 = scmp.lt.s32.totalorder %s277_s24, %s277_s24 }
  0x1a   :  { %323 = vmatpush3.bf16.xpose.msk.msra.mxu0 %vm319_vm1, %v318_v5  ;;  %v40_v13 = vld [vmem:[%s492_s1 + $0x18] sm:$0xff]  ;;  %324 = vmatprep.subr.bf16.mxu1 %v397_v14  ;;  %v183_v41 = vld [vmem:[%s494_s3] sm:$0x1]  ;;  %v192_v44 = vsub.s32 0, %v191_v43  ;;  %p368_p8 = scmp.ne.s32.totalorder %s277_s24, %s367_s25  ;;  %s371_s26 = scalar_lea.vmem %s277_s24, 32 }
  0x1b   :  { %315 = vmatprep.mubr.msk.f32.mxu1 %vm398_vm2, %v399_v15  ;;  %p373_p10 = scmp.lt.s32.totalorder %s371_s26, %s367_s25 }
  0x1c   :  { %64 = vperm.xlu0 %335, %v46_v8  }
  0x1d   :  { %54 = vperm.xlu1 %336, %v44_v9   ;;  %p374_p11 = por %p373_p10, %p372_p9 }
  0x1f   :  { %p375_p12 = pnand %p374_p11, %p368_p8 }
  0x20   :  { %187 = vperm.xlu0 %335, %v184_v11  }
  0x21   :  { %306 = vmatmul.mubr.msk.f32.vlgmr.msra.gmra.mrb[0].mxu0 %vm67_vm0, %v38_v10 }
  0x22   :  { %308 = vmatprep.mubr.msk.f32.mxu0 %vm67_vm0, %v39_v12 }
  0x25   :  { %309 = vmatmul.mubr.msk.f32.gmra.mrb[2].mxu0 %vm67_vm0, %v40_v13 }
  0x97   :  { %v60_v16 = vpop.permute.xlu0 %59 }
  0x98   :  { %v50_v17 = vpop.permute.xlu1 %49 }
  0x9b   :  { %v65_v20 = vpop.permute.xlu0 %64 }
  0x9c   :  { %v55_v24 = vpop.permute.xlu1 %54 }
  0x9f   :  { %v188_v45 = vpop.permute.xlu0 %187 }
  0xa0   :  { %v193_v46 = vrot.slane %v188_v45, %v192_v44 }
  0xf4   :  { %v307_v18 = vpop.f32.mrb[0].mxu0 }
  0xf5   :  { %v152_v19 = vpop.f32.mrb[1].mxu0  ;;  %v158_v28 = vadd.f32 %v307_v18, %v55_v24 }
  0xf6   :  { %v153_v29 = vadd.f32 %v152_v19, %v50_v17 }
  0xf8   :  { %v310_v21 = vpop.f32.mrb[2].mxu0 }
  0xf9   :  { %v168_v22 = vadd.f32 %v310_v21, %v65_v20  ;;  %v162_v23 = vpop.f32.mrb[3].mxu0 }
  0xfa   :  { %v163_v25 = vadd.f32 %v162_v23, %v60_v16 }
  0xfb   :  { %v174_v26 = vmul.f32 0.5, %v168_v22 }
  0xfc   :  { %v173_v27 = vmul.f32 0.5, %v163_v25 }
  0xfd   :  { %337 = vtanh.f32 %v174_v26 }
  0xfe   :  { %339 = vtanh.f32 %v173_v27 }
  0xff   :  { %341 = vtanh.f32 %v158_v28 }
 0x100   :  { %343 = vtanh.f32 %v153_v29 }
 0x107   :  { %v338_v30 = vpop.eup %337 }
 0x108   :  { %v340_v31 = vpop.eup %339  ;;  %v178_v32 = vadd.f32 1.0, %v338_v30 }
 0x109   :  { %v177_v33 = vadd.f32 1.0, %v340_v31  ;;  %v342_v35 = vpop.eup %341 }
 0x10a   :  { %v180_v34 = vmul.f32 0.5, %v178_v32  ;;  %v344_v37 = vpop.eup %343 }
 0x10b   :  { %v179_v36 = vmul.f32 0.5, %v177_v33 }
 0x10c   :  { %v182_v38 = vmul.f32 %v342_v35, %v180_v34 }
 0x10d   :  { %v181_v39 = vmul.f32 %v344_v37, %v179_v36 }
 0x10f   :  { %v325_v40 = vpack.c.bf16 %v182_v38, %v181_v39 }
 0x111   :  { %326 = vmatpush3.bf16.msra.mxu1 %v325_v40 }
 0x114   :  { %316 = vmatmul.mubr.msk.f32.vlgmr.msra.gmra.mrb[0].mxu1 %vm194_vm3, %v183_v41 }
 0x1e7   :  { %v264_v47 = vpop.f32.mrb[0].mxu1 }
 0x1e8   :  { %v265_v48 = vadd.f32 %v264_v47, %v193_v46  ;;  %v317_v49 = vpop.f32.mrb[1].mxu1 }
 0x1ea   :  { %269 = vst.msk [vmem:[#allocation6] sm:$0x1] %vm268_vm4, %v265_v48 }
 0x1eb   :  { %378 = shalt.err (!%p375_p12)
}
 0x1ec   :  { %s379_s28 = scalar_lea.hbm %s496_s5, 16 }
 0x1ed   :  { %p380_p13 = scmp.ne.s32.totalorder %s496_s5, %s379_s28  ;;  %p383_p0 = scmp.lt.u32.totalorder %s379_s28, %s496_s5 }
 0x1ef   :  { %p385_p1 = pnand %p383_p0, %p380_p13 }
 0x1f1   :  { %388 = shalt.err (!%p385_p1)
}
 0x1f2   :  { %279 = dma.vmem_to_hbm [thread:$0]  %s277_s24, 16, %s496_s5, [#allocation5]  }
 0x1f3   :  { %391 = dma.done.wait [#allocation5], 16  }
 0x1f4   :  { %392 = vsyncadd [#allocation5], 4294967280 }
 0x1f5   :  { %283 = vsyncpa [#allocation4], 1 }
 0x1f6   :  { %284 = vsyncpa [#allocation5], 1 }

</bundles_post_ra>
